<compile_context>
chip_gen: v7x
topology: tpu7x:2x2x1
jax: 0.10.0
libtpu: 0.0.40
codegen_flags: <defaults>
</compile_context>

<pallas_src>
import jax
import jax.numpy as jnp
import numpy as np
from jax.experimental import pallas as pl
from jax.experimental.pallas import tpu as pltpu


def _round_up(x, m):
    return (x + m - 1) // m * m


def _pick_n_tile(N, B, preferred):
    """Lane-dense tile size that (a) divides round_up(N, 128) so the kernel never
    pads beyond the minimal 128 alignment, and (b) keeps B * num_tiles >= 2 grid
    steps when possible (v7x has 2 TensorCores sharded over the parallel axes)."""
    N_pad = _round_up(N, 128)
    divs = [d for d in range(128, N_pad + 1, 128) if N_pad % d == 0]
    preferred = max(128, _round_up(int(preferred), 128))
    n_tile = max(d for d in divs if d <= preferred)          # 128 always qualifies
    if B * (N_pad // n_tile) < 2:                             # 2-TC occupancy gate
        smaller = [d for d in divs if d < n_tile and B * (N_pad // d) >= 2]
        if smaller:
            n_tile = max(smaller)
    return n_tile, N_pad


def _make_mlp_kernel(num_layers):
    """Fused MLP kernel body.

    Ref order: x_ref, w0_aug, (w_i, b_i for i=1..num_layers-1), o_ref
      x_ref  : [3, n_tile]       channels-first f32 input tile (x, y, score)
      w0_aug : [C1, 4]           f32 layer-0 weight with bias in column 3 (BN folded)
      w_i    : [Cout, Cin]       matmul-dtype weight (BN pre-folded, pre-cast)
      b_i    : [Cout, 1]         f32 bias (BN pre-folded)
      o_ref  : [feature_dim, n_tile]
    """

    def kernel(x_ref, *rest):
        o_ref = rest[-1]
        params = rest[:-1]

        # ---- layer 0 on the VPU (f32): 3 broadcast FMAs + folded bias ----
        w0 = params[0][...]                                   # [C1, 4] f32
        h = (w0[:, 0:1] * x_ref[0:1, :]
             + w0[:, 1:2] * x_ref[1:2, :]
             + w0[:, 2:3] * x_ref[2:3, :]
             + w0[:, 3:4])                                     # [C1, n_tile] f32
        if num_layers > 1:
            h = jnp.maximum(h, 0.0)                            # ReLU (BN folded)

        # ---- layers 1..L-1 on the MXU (bf16 operands, f32 accumulate) ----
        for li in range(1, num_layers):
            w = params[2 * li - 1][...]                        # [Cout, Cin]
            b = params[2 * li][...]                            # [Cout, 1] f32
            h = jnp.dot(w, h.astype(w.dtype),
                        preferred_element_type=jnp.float32)    # Conv1d(k=1)
            h = h + b                                          # bias (+ folded BN)
            if li < num_layers - 1:
                h = jnp.maximum(h, 0.0)                        # ReLU

        o_ref[...] = h.astype(o_ref.dtype)

    return kernel


def keypoint_encoder_forward(kpts, scores, weights, biases, bn_scales, bn_shifts,
                             *, n_tile=1024, matmul_dtype=jnp.bfloat16,
                             out_dtype=jnp.float32):
    """KeypointEncoder forward pass as one fused Pallas kernel.

    kpts    : [B, N, 2] float32
    scores  : [B, N]    float32
    weights : list of [Cout, Cin]  (PyTorch Conv1d weight, kernel_size=1 squeezed)
    biases  : list of [Cout]
    bn_scales, bn_shifts : lists (len = num_layers - 1) of [Cout]
                           scale = gamma / sqrt(running_var + eps)
                           shift = beta - running_mean * scale
    returns : [B, feature_dim, N]  (matches PyTorch Conv1d output layout)
    """
    B, N, _ = kpts.shape
    num_layers = len(weights)
    feature_dim = int(weights[-1].shape[0])

    n_tile, N_pad = _pick_n_tile(N, B, n_tile)

    # Channels-first [B, 3, N_pad] input (x, y, score); kept f32 so raw pixel
    # coordinates do not lose precision before layer 0 (which runs in f32).
    x = jnp.concatenate(
        [jnp.transpose(kpts, (0, 2, 1)).astype(jnp.float32),   # [B, 2, N]
         scores[:, None, :].astype(jnp.float32)], axis=1)      # [B, 3, N]
    if N_pad != N:
        x = jnp.pad(x, ((0, 0), (0, 0), (0, N_pad - N)))

    # Fold eval-mode BatchNorm into the preceding Conv1d: W' = s*W, b' = s*b + t.
    def fold(li):
        w = jnp.asarray(weights[li], jnp.float32)              # [Cout, Cin]
        b = jnp.asarray(biases[li], jnp.float32)               # [Cout]
        if li < num_layers - 1:
            s = jnp.asarray(bn_scales[li], jnp.float32)
            t = jnp.asarray(bn_shifts[li], jnp.float32)
            w = w * s[:, None]
            b = b * s + t
        return w, b

    # Layer-0 bias folded into W0's extra column (stays f32, VPU path).
    w0, b0 = fold(0)
    w0_aug = jnp.concatenate([w0, b0[:, None]], axis=1)        # [C1, 4]

    flat_params = [w0_aug]
    param_specs = [pl.BlockSpec(w0_aug.shape, lambda bi, j: (0, 0))]
    for li in range(1, num_layers):
        w, b = fold(li)
        w = w.astype(matmul_dtype)                             # pre-cast for the MXU
        b = b.reshape(-1, 1)                                   # [Cout, 1] f32
        flat_params += [w, b]
        param_specs += [pl.BlockSpec(w.shape, lambda bi, j: (0, 0)),
                        pl.BlockSpec(b.shape, lambda bi, j: (0, 0))]

    # Advisory cost estimate so XLA schedules/overlaps the custom call well.
    flops = 2 * B * N_pad * sum(int(w.shape[0]) * int(w.shape[1]) for w in weights)
    bytes_accessed = int(x.size) * 4
    bytes_accessed += sum(int(p.size) * p.dtype.itemsize for p in flat_params)
    bytes_accessed += B * feature_dim * N_pad * jnp.dtype(out_dtype).itemsize
    cost = pl.CostEstimate(flops=int(flops), transcendentals=0,
                           bytes_accessed=int(bytes_accessed))

    kernel = _make_mlp_kernel(num_layers)

    out = pl.pallas_call(
        kernel,
        out_shape=jax.ShapeDtypeStruct((B, feature_dim, N_pad), out_dtype),
        grid_spec=pltpu.PrefetchScalarGridSpec(
            num_scalar_prefetch=0,
            grid=(B, N_pad // n_tile),
            in_specs=[pl.BlockSpec((None, 3, n_tile),
                                   lambda bi, j: (bi, 0, j))] + param_specs,
            out_specs=pl.BlockSpec((None, feature_dim, n_tile),
                                   lambda bi, j: (bi, 0, j)),
        ),
        compiler_params=pltpu.CompilerParams(
            dimension_semantics=("parallel", "parallel")),
        cost_estimate=cost,
    )(x, *flat_params)

    if N_pad != N:
        # Only needed when N is not a multiple of 128 (exact output shape parity).
        out = out[:, :, :N]
    return out


def _reference_forward(kpts, scores, weights, biases, bn_scales, bn_shifts):
    """Pure-JAX f32 reference of the same forward pass."""
    B, N, _ = kpts.shape
    h = jnp.concatenate([kpts, scores[..., None]], axis=-1).reshape(B * N, 3)
    num_layers = len(weights)
    for li in range(num_layers):
        h = h @ jnp.asarray(weights[li]).T + jnp.asarray(biases[li])
        if li < num_layers - 1:
            h = h * jnp.asarray(bn_scales[li]) + jnp.asarray(bn_shifts[li])
            h = jnp.maximum(h, 0.0)
    F = weights[-1].shape[0]
    return h.reshape(B, N, F).transpose(0, 2, 1)


if __name__ == "__main__":
    # Small synthetic configuration: feature_dim=32, hidden layers=[8, 16].
    # MLP channels: [3, 8, 16, 32]
    B, N = 2, 64
    feature_dim = 32
    layers = [8, 16]
    channels = [3] + layers + [feature_dim]
    eps = 1e-5

    key = jax.random.PRNGKey(0)
    k_kpts, k_scores, *k_params = jax.random.split(key, 2 + 2 * (len(channels) - 1))

    kpts = jax.random.normal(k_kpts, (B, N, 2), jnp.float32)
    scores = jax.random.uniform(k_scores, (B, N), jnp.float32)

    weights, biases, bn_scales, bn_shifts = [], [], [], []
    num_layers = len(channels) - 1
    for i in range(num_layers):
        cin, cout = channels[i], channels[i + 1]
        kw, kb = k_params[2 * i], k_params[2 * i + 1]
        # Deterministic synthetic Conv1d params (kernel_size=1 -> [cout, cin]).
        w = jax.random.normal(kw, (cout, cin), jnp.float32) * (1.0 / np.sqrt(cin))
        if i == num_layers - 1:
            b = jnp.zeros((cout,), jnp.float32)  # nn.init.constant_(last.bias, 0.0)
        else:
            b = jax.random.normal(kb, (cout,), jnp.float32) * 0.1
        weights.append(w)
        biases.append(b)
        if i < num_layers - 1:
            # BatchNorm1d defaults: gamma=1, beta=0, running_mean=0, running_var=1.
            gamma = jnp.ones((cout,), jnp.float32)
            beta = jnp.zeros((cout,), jnp.float32)
            running_mean = jnp.zeros((cout,), jnp.float32)
            running_var = jnp.ones((cout,), jnp.float32)
            scale = gamma / jnp.sqrt(running_var + eps)
            shift = beta - running_mean * scale
            bn_scales.append(scale)
            bn_shifts.append(shift)

    ref = _reference_forward(kpts, scores, weights, biases, bn_scales, bn_shifts)

    # f32 MXU path: faithful to the PyTorch eval-mode forward.
    out_f32 = keypoint_encoder_forward(kpts, scores, weights, biases,
                                       bn_scales, bn_shifts,
                                       matmul_dtype=jnp.float32)
    out_f32 = jax.block_until_ready(out_f32)
    assert out_f32.shape == (B, feature_dim, N), out_f32.shape
    np.testing.assert_allclose(np.asarray(out_f32), np.asarray(ref),
                               rtol=1e-5, atol=1e-5)

    # Default bf16 MXU path (perf): bf16 weights/activations on the MXU,
    # f32 accumulate, f32 layer 0 / bias / ReLU.
    out_bf16 = keypoint_encoder_forward(kpts, scores, weights, biases,
                                        bn_scales, bn_shifts)
    out_bf16 = jax.block_until_ready(out_bf16)
    assert out_bf16.shape == (B, feature_dim, N), out_bf16.shape
    np.testing.assert_allclose(np.asarray(out_bf16), np.asarray(ref),
                               rtol=5e-2, atol=5e-2)

    print("KERNEL_OK")
</pallas_src>

<mosaic_0001>
module attributes {stable_mosaic.version = 11 : i64} {
  func.func @kernel(%arg0: i32, %arg1: i32, %arg2: memref<1x3x128xf32, #tpu.memory_space<vmem>>, %arg3: memref<8x4xf32, #tpu.memory_space<vmem>>, %arg4: memref<16x8xf32, #tpu.memory_space<vmem>>, %arg5: memref<16x1xf32, #tpu.memory_space<vmem>>, %arg6: memref<32x16xf32, #tpu.memory_space<vmem>>, %arg7: memref<32x1xf32, #tpu.memory_space<vmem>>, %arg8: memref<1x32x128xf32, #tpu.memory_space<vmem>>) attributes {dimension_semantics = [#tpu.dimension_semantics<parallel>, #tpu.dimension_semantics<parallel>], iteration_bounds = array<i64: 2, 1>, scalar_prefetch = 0 : i64, scratch_operands = 0 : i64, tpu.core_type = #tpu.core_type<tc>, window_params = [{transform_indices = @transform_0, window_bounds = array<i64: 1, 3, 128>}, {pipeline_mode = #tpu.pipeline_mode<synchronous>, transform_indices = @transform_1, window_bounds = array<i64: 8, 4>}, {pipeline_mode = #tpu.pipeline_mode<synchronous>, transform_indices = @transform_2, window_bounds = array<i64: 16, 8>}, {pipeline_mode = #tpu.pipeline_mode<synchronous>, transform_indices = @transform_3, window_bounds = array<i64: 16, 1>}, {pipeline_mode = #tpu.pipeline_mode<synchronous>, transform_indices = @transform_4, window_bounds = array<i64: 32, 16>}, {pipeline_mode = #tpu.pipeline_mode<synchronous>, transform_indices = @transform_5, window_bounds = array<i64: 32, 1>}, {transform_indices = @transform_6, window_bounds = array<i64: 1, 32, 128>}]} {
    %c0 = arith.constant 0 : index
    %c0_0 = arith.constant 0 : index
    %0 = vector.load %arg3[%c0, %c0_0] : memref<8x4xf32, #tpu.memory_space<vmem>>, vector<8x4xf32>
    %1 = vector.extract_strided_slice %0 {offsets = [0, 0], sizes = [8, 1], strides = [1, 1]} : vector<8x4xf32> to vector<8x1xf32>
    %c0_1 = arith.constant 0 : index
    %c0_2 = arith.constant 0 : index
    %c0_3 = arith.constant 0 : index
    %2 = vector.load %arg2[%c0_1, %c0_2, %c0_3] : memref<1x3x128xf32, #tpu.memory_space<vmem>>, vector<1x1x128xf32>
    %3 = vector.shape_cast %2 : vector<1x1x128xf32> to vector<1x128xf32>
    %4 = vector.broadcast %1 : vector<8x1xf32> to vector<8x128xf32>
    %5 = vector.broadcast %3 : vector<1x128xf32> to vector<8x128xf32>
    %6 = arith.mulf %4, %5 : vector<8x128xf32>
    %7 = vector.extract_strided_slice %0 {offsets = [0, 1], sizes = [8, 1], strides = [1, 1]} : vector<8x4xf32> to vector<8x1xf32>
    %c0_4 = arith.constant 0 : index
    %c1 = arith.constant 1 : index
    %c0_5 = arith.constant 0 : index
    %8 = vector.load %arg2[%c0_4, %c1, %c0_5] : memref<1x3x128xf32, #tpu.memory_space<vmem>>, vector<1x1x128xf32>
    %9 = vector.shape_cast %8 : vector<1x1x128xf32> to vector<1x128xf32>
    %10 = vector.broadcast %7 : vector<8x1xf32> to vector<8x128xf32>
    %11 = vector.broadcast %9 : vector<1x128xf32> to vector<8x128xf32>
    %12 = arith.mulf %10, %11 : vector<8x128xf32>
    %13 = arith.addf %6, %12 : vector<8x128xf32>
    %14 = vector.extract_strided_slice %0 {offsets = [0, 2], sizes = [8, 1], strides = [1, 1]} : vector<8x4xf32> to vector<8x1xf32>
    %c0_6 = arith.constant 0 : index
    %c2 = arith.constant 2 : index
    %c0_7 = arith.constant 0 : index
    %15 = vector.load %arg2[%c0_6, %c2, %c0_7] : memref<1x3x128xf32, #tpu.memory_space<vmem>>, vector<1x1x128xf32>
    %16 = vector.shape_cast %15 : vector<1x1x128xf32> to vector<1x128xf32>
    %17 = vector.broadcast %14 : vector<8x1xf32> to vector<8x128xf32>
    %18 = vector.broadcast %16 : vector<1x128xf32> to vector<8x128xf32>
    %19 = arith.mulf %17, %18 : vector<8x128xf32>
    %20 = arith.addf %13, %19 : vector<8x128xf32>
    %21 = vector.extract_strided_slice %0 {offsets = [0, 3], sizes = [8, 1], strides = [1, 1]} : vector<8x4xf32> to vector<8x1xf32>
    %22 = vector.broadcast %21 : vector<8x1xf32> to vector<8x128xf32>
    %23 = arith.addf %20, %22 : vector<8x128xf32>
    %cst = arith.constant 0.000000e+00 : f32
    %24 = vector.broadcast %cst : f32 to vector<8x128xf32>
    %25 = arith.maximumf %23, %24 : vector<8x128xf32>
    %c0_8 = arith.constant 0 : index
    %c0_9 = arith.constant 0 : index
    %26 = vector.load %arg4[%c0_8, %c0_9] : memref<16x8xf32, #tpu.memory_space<vmem>>, vector<16x8xf32>
    %c0_10 = arith.constant 0 : index
    %c0_11 = arith.constant 0 : index
    %27 = vector.load %arg5[%c0_10, %c0_11] : memref<16x1xf32, #tpu.memory_space<vmem>>, vector<16x1xf32>
    %cst_12 = arith.constant dense<0.000000e+00> : vector<16x128xf32>
    %28 = tpu.matmul %26, %25, %cst_12 {dimension_numbers = #tpu.dot_dimension_numbers<[1], [0], [0], [1], [0, 0, 1, 1], [], []>} : vector<16x8xf32>, vector<8x128xf32>, vector<16x128xf32> -> vector<16x128xf32>
    %29 = vector.broadcast %27 : vector<16x1xf32> to vector<16x128xf32>
    %30 = arith.addf %28, %29 : vector<16x128xf32>
    %cst_13 = arith.constant 0.000000e+00 : f32
    %31 = vector.broadcast %cst_13 : f32 to vector<16x128xf32>
    %32 = arith.maximumf %30, %31 : vector<16x128xf32>
    %c0_14 = arith.constant 0 : index
    %c0_15 = arith.constant 0 : index
    %33 = vector.load %arg6[%c0_14, %c0_15] : memref<32x16xf32, #tpu.memory_space<vmem>>, vector<32x16xf32>
    %c0_16 = arith.constant 0 : index
    %c0_17 = arith.constant 0 : index
    %34 = vector.load %arg7[%c0_16, %c0_17] : memref<32x1xf32, #tpu.memory_space<vmem>>, vector<32x1xf32>
    %cst_18 = arith.constant dense<0.000000e+00> : vector<32x128xf32>
    %35 = tpu.matmul %33, %32, %cst_18 {dimension_numbers = #tpu.dot_dimension_numbers<[1], [0], [0], [1], [0, 0, 1, 1], [], []>} : vector<32x16xf32>, vector<16x128xf32>, vector<32x128xf32> -> vector<32x128xf32>
    %36 = vector.broadcast %34 : vector<32x1xf32> to vector<32x128xf32>
    %37 = arith.addf %35, %36 : vector<32x128xf32>
    %c0_19 = arith.constant 0 : index
    %c0_20 = arith.constant 0 : index
    %c0_21 = arith.constant 0 : index
    %38 = vector.load %arg8[%c0_19, %c0_20, %c0_21] : memref<1x32x128xf32, #tpu.memory_space<vmem>>, vector<1x32x128xf32>
    %39 = vector.shape_cast %38 : vector<1x32x128xf32> to vector<32x128xf32>
    %40 = vector.shape_cast %37 : vector<32x128xf32> to vector<1x32x128xf32>
    tpu.vector_store %arg8[%c0_19, %c0_20, %c0_21], %40 {strides = array<i32>} : memref<1x32x128xf32, #tpu.memory_space<vmem>>, vector<1x32x128xf32>,
    return
  }
  func.func @transform_0(%arg0: i32, %arg1: i32) -> (i32, i32, i32) {
    %c0_i32 = arith.constant 0 : i32
    %c0_i32_0 = arith.constant 0 : i32
    return %arg0, %c0_i32, %arg1 : i32, i32, i32
  }
  func.func @transform_1(%arg0: i32, %arg1: i32) -> (i32, i32) {
    %c0_i32 = arith.constant 0 : i32
    %c0_i32_0 = arith.constant 0 : i32
    %c0_i32_1 = arith.constant 0 : i32
    return %c0_i32, %c0_i32_0 : i32, i32
  }
  func.func @transform_2(%arg0: i32, %arg1: i32) -> (i32, i32) {
    %c0_i32 = arith.constant 0 : i32
    %c0_i32_0 = arith.constant 0 : i32
    %c0_i32_1 = arith.constant 0 : i32
    return %c0_i32, %c0_i32_0 : i32, i32
  }
  func.func @transform_3(%arg0: i32, %arg1: i32) -> (i32, i32) {
    %c0_i32 = arith.constant 0 : i32
    %c0_i32_0 = arith.constant 0 : i32
    %c0_i32_1 = arith.constant 0 : i32
    return %c0_i32, %c0_i32_0 : i32, i32
  }
  func.func @transform_4(%arg0: i32, %arg1: i32) -> (i32, i32) {
    %c0_i32 = arith.constant 0 : i32
    %c0_i32_0 = arith.constant 0 : i32
    %c0_i32_1 = arith.constant 0 : i32
    return %c0_i32, %c0_i32_0 : i32, i32
  }
  func.func @transform_5(%arg0: i32, %arg1: i32) -> (i32, i32) {
    %c0_i32 = arith.constant 0 : i32
    %c0_i32_0 = arith.constant 0 : i32
    %c0_i32_1 = arith.constant 0 : i32
    return %c0_i32, %c0_i32_0 : i32, i32
  }
  func.func @transform_6(%arg0: i32, %arg1: i32) -> (i32, i32, i32) {
    %c0_i32 = arith.constant 0 : i32
    %c0_i32_0 = arith.constant 0 : i32
    return %arg0, %c0_i32, %arg1 : i32, i32, i32
  }
}

</mosaic_0001>

<bundles_post_ra>
// kernel: tpu_custom_call.1
= control target key start
LH: loop header
LB: loop body
LE: loop exit
PB: predicated region body
PF: predicated region fallthrough
CT: control target
= control target key end

     0   :  { %11 = vsyncpa [#allocation3], 0  ;;  %s1031_s0 = inlined_call_operand.vmem [shape: f32[2,3,128], index: 0, kind: input, shape index: {}]   ;;  %s1032_s1 = inlined_call_operand.vmem [shape: f32[8,4], index: 1, kind: input, shape index: {}]   ;;  %s1033_s2 = inlined_call_operand.vmem [shape: f32[16,8], index: 2, kind: input, shape index: {}]   ;;  %s1034_s3 = inlined_call_operand.vmem [shape: f32[16,1], index: 3, kind: input, shape index: {}]   ;;  %s1035_s4 = inlined_call_operand.vmem [shape: f32[32,16], index: 4, kind: input, shape index: {}]   ;;  %s1036_s5 = inlined_call_operand.vmem [shape: f32[32,1], index: 5, kind: input, shape index: {}]   ;;  %s1037_s6 = inlined_call_operand.hbm [shape: f32[2,32,128], index: 6, kind: output, shape index: {}]  }
   0x1   :  { %13 = vsyncpa [#allocation3 + $0x1], 0  ;;  %s871_s21 = smov 0   ;;  %s873_s22 = smov 0  }
   0x2   :  { %s875_s23 = smov 0   ;;  %s877_s24 = smov 0  }
   0x3   :  { %s879_s25 = smov 0   ;;  %s881_s26 = smov 0  }
   0x4 LB: > { %s630_s27 = sadd.s32 4294967295, %s827_s26   ;;  %s631_s28 = sadd.s32 4294967294, %s827_s26   ;;  %s827_s26 = sphi %s881_s26, %s19_s26   ;;  %s823_s25 = sphi %s879_s25, %s1044_s25   ;;  %s819_s24 = sphi %s877_s24, %s1043_s24   ;;  %s815_s23 = sphi %s875_s23, %s1042_s23   ;;  %s811_s22 = sphi %s873_s22, %s1041_s22   ;;  %s807_s21 = sphi %s871_s21, %s1040_s21  }
   0x5   : > { %s31_s29 = sadd.s32 1, %s823_s25  ;;  %s173_s30 = sadd.s32 1, %s815_s23 }
   0x6   : > { %p33_p0 = scmp.ge.s32.totalorder %s31_s29, 2  ;;  %p183_p1 = scmp.ne.s32.totalorder %s815_s23, %s811_s22 }
   0x7   : > { %p184_p2 = scmp.eq.s32.totalorder %s630_s27, 1  ;;  %p189_p3 = scmp.ne.s32.totalorder %s811_s22, %s807_s21 }
   0x8   : > { %s1046_s29 = smov (%p33_p0, %s31_s29), 0  ;;  %p190_p5 = scmp.eq.s32.totalorder %s631_s28, 1 }
   0x9   : > { %p911_p4 = por %p184_p2, %p183_p1  ;;  %s168_s8 = ssub.s32 %s823_s25, %s1046_s29 }
   0xa   : > { %p634_p6 = scmp.ge.s32.totalorder %s827_s26, 1  ;;  %p171_p7 = scmp.eq.s32.totalorder %s168_s8, 0 }
   0xb   : > { %p918_p8 = por %p190_p5, %p189_p3  ;;  %p233_p9 = scmp.lt.s32.totalorder %s827_s26, 3 }
   0xc   : > { %s924_s10 = scalar_select %p171_p7, %s815_s23, %s173_s30  }
   0xd   : > { %p234_p10 = pnand %p634_p6, %p233_p9 }
   0xe   : > { %v272_v0 = vld [vmem:[%s1032_s1] sm:$0xff] (!%p234_p10)  ;;  %v829_v1 = vmov (!%p234_p10), 0   ;;  %v830_v2 = vmov (!%p234_p10), 2   ;;  %v831_v3 = vmov (!%p234_p10), 1   ;;  %v832_v4 = vmov (!%p234_p10), 3   ;;  %v315_v7 = vld [vmem:[%s1034_s3 + $0x8] sm:$0xff] (!%p234_p10) }
   0xf   : > { %237 = sbr.rel (%p234_p10) target bundleno = 614 (0x266), region = 44  ;;  %743 = vset.pattern.permute.xlu0 (!%p234_p10), %v829_v1  ;;  %745 = vset.pattern.permute.xlu1 (!%p234_p10), %v830_v2  ;;  %v312_v5 = vld [vmem:[%s1033_s2] sm:$0xff] (!%p234_p10)  ;;  %vm326_vm0 = vcmask (!%p234_p10), 64512   ;;  %v416_v9 = vld [vmem:[%s1036_s5 + $0x10] sm:$0xff] (!%p234_p10)  ;;  %v415_v10 = vld [vmem:[%s1036_s5 + $0x8] sm:$0xff] (!%p234_p10)  ;;  %p265_p11 = scmp.lt.s32.totalorder (!%p234_p10), %s819_s24, 1 }
  0x10   : > { %276 = vperm.xlu0 (!%p234_p10), %743, %v272_v0   ;;  %297 = vperm.xlu1 (!%p234_p10), %745, %v272_v0   ;;  %v314_v6 = vld [vmem:[%s1034_s3] sm:$0xff] (!%p234_p10)  ;;  %v417_v11 = vld [vmem:[%s1036_s5 + $0x18] sm:$0xff] (!%p234_p10)  ;;  %v313_v26 = vld [vmem:[%s1033_s2 + $0x8] sm:$0xff] (!%p234_p10)  ;;  %vm438_vm1 = vcmask (!%p234_p10), 130048   ;;  %s651_s18 = sshll.u32 (!%p234_p10), %s819_s24, 9  ;;  %s833_s30 = smov (!%p234_p10), [#allocation2]  }
  0x11   : > { %663 = vmatprep.mubr.msk.f32.mxu0 (!%p234_p10), %vm326_vm0, %v312_v5  ;;  %v414_v8 = vld [vmem:[%s1036_s5] sm:$0xff] (!%p234_p10)  ;;  %v412_v28 = vld [vmem:[%s1035_s4 + $0x10] sm:$0xff] (!%p234_p10)  ;;  %v411_v38 = vld [vmem:[%s1035_s4 + $0x8] sm:$0xff] (!%p234_p10)  ;;  %s983_s27 = scalar_lea.hbm (!%p234_p10), %s1037_s6, %s651_s18  ;;  %s753_s8 = sshll.u32 (!%p234_p10), %s833_s30, 4  ;;  %s754_s8 = int_to_ptr.vmem [resolvable:$false] %s753_s8 }
  0x12   : > { %v410_v27 = vld [vmem:[%s1035_s4] sm:$0xff] (!%p234_p10)  ;;  %673 = vmatprep.mubr.msk.f32.mxu1 (!%p234_p10), %vm438_vm1, %v412_v28  ;;  %v413_v39 = vld [vmem:[%s1035_s4 + $0x18] sm:$0xff] (!%p234_p10)  ;;  %s755_s11 = scalar_lea.vmem (!%p234_p10), %s754_s8, 1024 }
  0x14   : > { %744 = vset.pattern.permute.xlu0 (!%p234_p10), %v831_v3  ;;  %746 = vset.pattern.permute.xlu1 (!%p234_p10), %v832_v4 }
  0x15   : > { %286 = vperm.xlu0 (!%p234_p10), %744, %v272_v0   ;;  %307 = vperm.xlu1 (!%p234_p10), %746, %v272_v0  }
  0x16   : > { %s266_s13 = scalar_select %p265_p11, %s819_s24, 1 }
  0x18   : > { %s636_s14 = sshll.u32 %s266_s13, 2 }
  0x19   : > { %747 = vset.pattern.permute.xlu1 %v829_v1  ;;  %748 = vset.pattern.permute.xlu0 %v829_v1  ;;  %s271_s17 = scalar_lea.vmem %s1031_s0, %s636_s14  ;;  %s262_s14 = sand.u32 1, %s811_s22  }
  0x1a   : > { %318 = vperm.xlu1 %747, %v314_v6   ;;  %323 = vperm.xlu0 %748, %v315_v7   ;;  %v637_v13 = vld [vmem:[%s271_s17] ss:$0 sm:$0xff]  ;;  %v638_v14 = vld [vmem:[%s271_s17 + $0x1] ss:$0 sm:$0xff]  ;;  %v639_v16 = vld [vmem:[%s271_s17 + $0x2] ss:$0 sm:$0xff] }
  0x1b   : > { %s635_s15 = sshll.u32 %s262_s14, 5  ;;  %s985_s24 = scalar_lea.sflag [#allocation3], %s262_s14 }
  0x1c   : > { %s264_s16 = scalar_lea.vmem [#allocation2], %s635_s15 }
  0x1d   : > { %s555_s17 = sshll.u32 %s264_s16, 4  ;;  %s978_s17 = int_to_ptr.vmem [resolvable:$true] %s555_s17 }
  0x1e   : > { %420 = vperm.xlu1 %747, %v414_v8   ;;  %430 = vperm.xlu0 %748, %v416_v9   ;;  %s749_s28 = scalar_lea.vmem %s978_s17, 512  ;;  %p756_p1 = scmp.lt.s32.totalorder %s978_s17, %s754_s8 }
  0x1f   : > { %p750_p12 = scmp.ne.s32.totalorder %s978_s17, %s749_s28  ;;  %p757_p2 = scmp.lt.s32.totalorder %s755_s11, %s749_s28 }
  0x21   : > { %p751_p13 = pnand %p750_p12, %p911_p4  ;;  %p758_p3 = por %p757_p2, %p756_p1 }
  0x22   : > { %425 = vperm.xlu1 %747, %v415_v10  }
  0x23   : > { %p752_p0 = pneg %p751_p13 }
  0x25   : > { %p759_p5 = pnand %p758_p3, %p752_p0 }
  0x26   : > { %435 = vperm.xlu1 %747, %v417_v11  }
  0x8f   : > { %v277_v12 = vpop.permute.xlu0 %276  ;;  %v298_v15 = vpop.permute.xlu1 %297 }
  0x90   : > { %v283_v18 = vmul.f32 %v637_v13, %v277_v12  ;;  %v304_v20 = vmul.f32 %v639_v16, %v298_v15 }
  0x94   : > { %v287_v17 = vpop.permute.xlu0 %286  ;;  %v308_v22 = vpop.permute.xlu1 %307 }
  0x95   : > { %v293_v19 = vmul.f32 %v638_v14, %v287_v17 }
  0x97   : > { %v294_v21 = vadd.f32 %v293_v19, %v283_v18 }
  0x99   : > { %v305_v23 = vadd.f32 %v304_v20, %v294_v21  ;;  %v324_v29 = vpop.permute.xlu0 %323  ;;  %v319_v31 = vpop.permute.xlu1 %318 }
  0x9b   : > { %v310_v24 = vadd.f32 %v308_v22, %v305_v23 }
  0x9d   : > { %v311_v25 = vmax.f32 %v310_v24, 0.0  ;;  %v421_v40 = vpop.permute.xlu1 %420  ;;  %v431_v43 = vpop.permute.xlu0 %430 }
  0x9f   : > { %661 = vmatprep.subr.mxu0 %v311_v25 }
  0xa0   : > { %662 = vmatpush3.msra.mxu0 %v311_v25 }
  0xa1   : > { %664 = vmatmul.mubr.msk.f32.vlgmr.msra.gmra.mrb[0].mxu0 %vm326_vm0, %v313_v26  ;;  %v426_v41 = vpop.permute.xlu1 %425 }
  0xa2   : > { %670 = vmatprep.mubr.msk.f32.mxu0 %vm438_vm1, %v410_v27 }
  0xa5   : > { %v436_v42 = vpop.permute.xlu1 %435 }
 0x174   : > { %v665_v30 = vpop.f32.mrb[0].mxu0 }
 0x175   : > { %v405_v32 = vadd.f32 %v665_v30, %v324_v29  ;;  %v399_v33 = vpop.f32.mrb[1].mxu0 }
 0x176   : > { %v400_v34 = vadd.f32 %v399_v33, %v319_v31 }
 0x177   : > { %v409_v35 = vmax.f32 %v405_v32, 0.0 }
 0x178   : > { %v408_v36 = vmax.f32 %v400_v34, 0.0 }
 0x17a   : > { %v676_v37 = vpack.c.bf16 %v409_v35, %v408_v36 }
 0x17c   : > { %677 = vmatprep.subr.bf16.mxu0 %v676_v37  ;;  %680 = vmatprep.subr.bf16.mxu1 %v676_v37 }
 0x17d   : > { %679 = vmatpush3.bf16.msra.mxu0 %v676_v37  ;;  %681 = vmatpush3.bf16.msra.mxu1 %v676_v37 }
 0x180   : > { %671 = vmatmul.mubr.msk.f32.vlgmr.msra.gmra.mrb[2].mxu0 %vm438_vm1, %v411_v38  ;;  %674 = vmatmul.mubr.msk.f32.vlgmr.msra.gmra.mrb[0].mxu1 %vm438_vm1, %v413_v39 }
 0x253   : > { %v672_v44 = vpop.f32.mrb[2].mxu0  ;;  %v675_v45 = vpop.f32.mrb[0].mxu1 }
 0x254   : > { %v523_v46 = vadd.f32 %v672_v44, %v426_v41  ;;  %v533_v47 = vadd.f32 %v675_v45, %v436_v42  ;;  %v517_v48 = vpop.f32.mrb[3].mxu0  ;;  %v527_v49 = vpop.f32.mrb[1].mxu1 }
 0x255   : > { %v518_v50 = vadd.f32 %v517_v48, %v421_v40  ;;  %v528_v51 = vadd.f32 %v527_v49, %v431_v43 }
 0x256   : > { %537 = vst [vmem:[%s264_s16 + $0x8] sm:$0xff] %v523_v46  ;;  %539 = vst [vmem:[%s264_s16 + $0x18] sm:$0xff] %v533_v47 }
 0x257   : > { %536 = vst [vmem:[%s264_s16] sm:$0xff] %v518_v50  ;;  %538 = vst [vmem:[%s264_s16 + $0x10] sm:$0xff] %v528_v51 }
 0x258   : > { %762 = shalt.err (!%p759_p5)
}
 0x259   : > { %s763_s12 = scalar_lea.hbm %s983_s27, 512  ;;  %s767_s15 = scalar_lea.hbm %s1037_s6, 1024 }
 0x25a   : > { %p764_p6 = scmp.ne.s32.totalorder %s983_s27, %s763_s12  ;;  %p768_p10 = scmp.lt.u32.totalorder %s983_s27, %s1037_s6 }
 0x25b   : > { %p769_p11 = scmp.lt.u32.totalorder %s767_s15, %s763_s12  ;;  %p771_p13 = scmp.lt.u32.totalorder %s763_s12, %s983_s27 }
 0x25c   : > { %p765_p7 = pnand %p764_p6, %p911_p4 }
 0x25d   : > { %p770_p12 = por %p769_p11, %p768_p10 }
 0x25e   : > { %p766_p9 = pneg %p765_p7 }
 0x25f   : > { %p772_p0 = por %p771_p13, %p770_p12 }
 0x261   : > { %p773_p1 = pnand %p772_p0, %p766_p9 }
 0x263   : > { %776 = shalt.err (!%p773_p1)
}
 0x264   : > { %s834_s19 = smov 128   ;;  %s835_s20 = smov 8  }
 0x265   : > { %682 = dma.vmem_to_hbm [thread:$0]  (%p911_p4), %s978_s17, 512, %s983_s27, %s985_s24, %s834_s19, %s834_s19, %s835_s20  }
 0x266 PF: > { %p688_p2 = scmp.ge.s32.totalorder %s827_s26, 2  ;;  %s570_s28 = sand.u32 1, %s807_s21  }
 0x267   : > { %s571_s30 = scalar_lea.sflag [#allocation3], %s570_s28 }
 0x268   : > { %p685_p3 = pnand %p688_p2, %p918_p8 }
 0x26a   : > { %802 = dma.done.wait (!%p685_p3), %s571_s30, 512  }
 0x26b   : > { %804 = vsyncadd (!%p685_p3), %s571_s30, 4294966784  ;;  %s19_s26 = sadd.s32 1, %s827_s26   ;;  %s1040_s21 = smov %s811_s22 }
 0x26c   : > { %p16_p5 = scmp.ge.s32.totalorder %s19_s26, 4   ;;  %s1041_s22 = smov %s815_s23 }
 0x26d   : > { %s1042_s23 = smov %s924_s10  ;;  %s1043_s24 = smov %s823_s25 }
 0x26e   : > { %s1044_s25 = smov %s1046_s29  ;;  %18 = sbr.rel (!%p16_p5) target bundleno = 4 (0x4), region = 79 }
 0x275   :  { %576 = vsyncpa [#allocation3], 1 }
 0x276   :  { %578 = vsyncpa [#allocation3 + $0x1], 1 }

</bundles_post_ra>
